<compile_context>
chip_gen: v7x
topology: tpu7x:2x2x1
jax: 0.10.0
libtpu: 0.0.40
codegen_flags: <defaults>
</compile_context>

<pallas_src>
import functools
import math

import jax
import jax.numpy as jnp
from jax.experimental import pallas as pl
from jax.experimental.pallas import tpu as pltpu

N_HEADS = 4
D_EMBED = 32
D_CROSS = 16
D_HEAD = D_EMBED // N_HEADS
OUT_LANES = 128   # lane-dense output width


def _cross_attention_kernel(xy_ref, wqkv_ref, bqkv_ref, mask_ref, wo_ref, bo_ref,
                            o_ref, *, seq_q, seq_kv, n_heads, d_head):
    f32 = jnp.float32
    d_embed = n_heads * d_head
    scale = 1.0 / math.sqrt(d_head)

    # ---- fused Q|K|V projection: one MXU matmul for this batch element --------
    # xy = [x | 0 ; 0 | y], wqkv = blkdiag(Wq, [Wk|Wv])  ->  proj = [Q | . | . ; . | K | V]
    proj = jnp.dot(xy_ref[...], wqkv_ref[...],
                   preferred_element_type=f32) + bqkv_ref[...]
    q = proj[:seq_q, :d_embed]                     # (Sq,  D)
    k = proj[seq_q:, d_embed:2 * d_embed]          # (Skv, D)
    v = proj[seq_q:, 2 * d_embed:]                 # (Skv, D)

    mask = mask_ref[...]                           # (H*Skv, D) block-diag head mask

    # ---- block-diagonal head expansion (row form, no transpose) ---------------
    # Row c = h*Skv + j holds k[j] / v[j] restricted to head h's d_head slice.
    k_exp = jnp.concatenate([k] * n_heads, axis=0) * mask    # (H*Skv, D)
    v_exp = jnp.concatenate([v] * n_heads, axis=0) * mask    # (H*Skv, D)

    # Scores for every (head, kv) column at once; contract the last dim of both
    # operands (standard q @ k^T MXU form — no XLU transpose, no relayout copy).
    s = jax.lax.dot_general(q, k_exp, (((1,), (1,)), ((), ())),
                            preferred_element_type=f32)      # (Sq, H*Skv)

    # Stable unnormalized softmax; 1/sqrt(d_head) folded into the exp argument.
    # TODO(synk): switch to a per-head row max at realistic logit ranges; the
    # global row max is exact here and cheaper at this width.
    m = jnp.max(s, axis=-1, keepdims=True)
    p = jnp.exp((s - m) * scale)                             # (Sq, H*Skv)

    # ---- augmented P@V: numerator + per-head denominators in one matmul -------
    # The head mask doubles as the ones-columns that sum p per head.
    rhs = jnp.concatenate([v_exp, mask], axis=1)             # (H*Skv, 2D)
    out_aug = jnp.dot(p, rhs, preferred_element_type=f32)    # (Sq, 2D)
    num = out_aug[:, :d_embed]
    den = out_aug[:, d_embed:]
    attn = num * pl.reciprocal(den, approx=False)            # exact; EUP slot is free

    # ---- output projection (zero-padded to 128 lanes -> unmasked full vst) ----
    out = jnp.dot(attn, wo_ref[...], preferred_element_type=f32) + bo_ref[...]
    o_ref[...] = out.astype(o_ref.dtype)                     # (Sq, 128) lane-dense


def cross_attention(x, y, params, n_heads=N_HEADS):
    B, Sq, D = x.shape
    _, Skv, Dc = y.shape
    d_head = D // n_heads
    n_cols = n_heads * Skv
    f32 = jnp.float32
    wq, bq, wk, bk, wv, bv, wo, bo = params

    # --- constant / weight-side preprocessing, hoisted out of the kernel -------
    # Fused projection weight/bias: Q, K, V from ONE matmul.
    w_qkv = jnp.concatenate([
        jnp.concatenate([wq, jnp.zeros((D, 2 * D), f32)], axis=1),
        jnp.concatenate([jnp.zeros((Dc, D), f32), wk, wv], axis=1),
    ], axis=0)                                               # (D+Dc, 3D)
    b_qkv = jnp.concatenate([bq, bk, bv], axis=1)            # (1, 3D)

    # Block-diagonal head mask, shared by K/V expansion and the denominator columns.
    col_head = jnp.arange(n_cols, dtype=jnp.int32) // Skv
    dim_head = jnp.arange(D, dtype=jnp.int32) // d_head
    mask_kv = (col_head[:, None] == dim_head[None, :]).astype(f32)   # (n_cols, D)

    # Zero-pad the output projection to 128 lanes for unmasked stores.
    wo_p = jnp.concatenate([wo, jnp.zeros((D, OUT_LANES - D), f32)], axis=1)
    bo_p = jnp.concatenate([bo, jnp.zeros((1, OUT_LANES - D), f32)], axis=1)

    # Block-diagonal stacked input [x | 0 ; 0 | y] per batch element.
    xy = jnp.concatenate([
        jnp.concatenate([x, jnp.zeros((B, Sq, Dc), f32)], axis=-1),
        jnp.concatenate([jnp.zeros((B, Skv, D), f32), y], axis=-1),
    ], axis=1)                                               # (B, Sq+Skv, D+Dc)

    kernel = functools.partial(_cross_attention_kernel, seq_q=Sq, seq_kv=Skv,
                               n_heads=n_heads, d_head=d_head)

    out = pl.pallas_call(
        kernel,
        grid=(B,),
        in_specs=[
            pl.BlockSpec((None, Sq + Skv, D + Dc), lambda b: (b, 0, 0)),  # per-batch
            pl.BlockSpec((D + Dc, 3 * D), lambda b: (0, 0)),              # resident
            pl.BlockSpec((1, 3 * D), lambda b: (0, 0)),                   # resident
            pl.BlockSpec((n_cols, D), lambda b: (0, 0)),                  # resident
            pl.BlockSpec((D, OUT_LANES), lambda b: (0, 0)),               # resident
            pl.BlockSpec((1, OUT_LANES), lambda b: (0, 0)),               # resident
        ],
        out_specs=pl.BlockSpec((None, Sq, OUT_LANES), lambda b: (b, 0, 0)),
        out_shape=jax.ShapeDtypeStruct((B, Sq, OUT_LANES), x.dtype),
        compiler_params=pltpu.CompilerParams(
            dimension_semantics=("parallel",)),   # 2nd TC on v7x; no-op on v5e/v6e
    )(xy, w_qkv, b_qkv, mask_kv, wo_p, bo_p)

    return out[..., :D]


def reference(x, y, params, n_heads=N_HEADS):
    """Pure-JAX reference reproducing the PyTorch forward (f32, highest precision)."""
    wq, bq, wk, bk, wv, bv, wo, bo = params
    B, Sq, D = x.shape
    d_head = D // n_heads
    hp = jax.lax.Precision.HIGHEST
    q = jnp.einsum('bsd,de->bse', x, wq, precision=hp) + bq
    k = jnp.einsum('bsd,de->bse', y, wk, precision=hp) + bk
    v = jnp.einsum('bsd,de->bse', y, wv, precision=hp) + bv
    q = q.reshape(B, Sq, n_heads, d_head).transpose(0, 2, 1, 3)
    k = k.reshape(B, -1, n_heads, d_head).transpose(0, 2, 1, 3)
    v = v.reshape(B, -1, n_heads, d_head).transpose(0, 2, 1, 3)
    s = jnp.einsum('bhqd,bhkd->bhqk', q, k, precision=hp) / math.sqrt(d_head)
    p = jax.nn.softmax(s, axis=-1)
    o = jnp.einsum('bhqk,bhkd->bhqd', p, v, precision=hp)
    o = o.transpose(0, 2, 1, 3).reshape(B, Sq, D)
    return jnp.einsum('bsd,de->bse', o, wo, precision=hp) + bo


def init_params(key):
    ks = jax.random.split(key, 8)
    scale = 0.05
    wq = scale * jax.random.normal(ks[0], (D_EMBED, D_EMBED), jnp.float32)
    bq = scale * jax.random.normal(ks[1], (1, D_EMBED), jnp.float32)
    wk = scale * jax.random.normal(ks[2], (D_CROSS, D_EMBED), jnp.float32)
    bk = scale * jax.random.normal(ks[3], (1, D_EMBED), jnp.float32)
    wv = scale * jax.random.normal(ks[4], (D_CROSS, D_EMBED), jnp.float32)
    bv = scale * jax.random.normal(ks[5], (1, D_EMBED), jnp.float32)
    wo = scale * jax.random.normal(ks[6], (D_EMBED, D_EMBED), jnp.float32)
    bo = scale * jax.random.normal(ks[7], (1, D_EMBED), jnp.float32)
    return (wq, bq, wk, bk, wv, bv, wo, bo)


if __name__ == "__main__":
    key = jax.random.PRNGKey(0)
    kx, ky, kp = jax.random.split(key, 3)

    B, SQ, SKV = 2, 16, 8
    x = jax.random.normal(kx, (B, SQ, D_EMBED), jnp.float32)
    y = jax.random.normal(ky, (B, SKV, D_CROSS), jnp.float32)
    params = init_params(kp)

    out = jax.block_until_ready(jax.jit(cross_attention)(x, y, params))
    ref = jax.block_until_ready(reference(x, y, params))

    assert out.shape == (B, SQ, D_EMBED)
    max_err = float(jnp.max(jnp.abs(out - ref)))
    assert jnp.allclose(out, ref, atol=1e-3, rtol=1e-3), f"mismatch vs reference: {max_err}"

    print("KERNEL_OK")
</pallas_src>

<mosaic_0001>
module attributes {stable_mosaic.version = 11 : i64} {
  func.func @_cross_attention_kernel(%arg0: i32, %arg1: memref<1x24x48xf32, #tpu.memory_space<vmem>>, %arg2: memref<48x96xf32, #tpu.memory_space<vmem>>, %arg3: memref<1x96xf32, #tpu.memory_space<vmem>>, %arg4: memref<32x32xf32, #tpu.memory_space<vmem>>, %arg5: memref<32x128xf32, #tpu.memory_space<vmem>>, %arg6: memref<1x128xf32, #tpu.memory_space<vmem>>, %arg7: memref<1x16x128xf32, #tpu.memory_space<vmem>>) attributes {dimension_semantics = [#tpu.dimension_semantics<parallel>], iteration_bounds = array<i64: 2>, scalar_prefetch = 0 : i64, scratch_operands = 0 : i64, tpu.core_type = #tpu.core_type<tc>, window_params = [{transform_indices = @transform_0, window_bounds = array<i64: 1, 24, 48>}, {pipeline_mode = #tpu.pipeline_mode<synchronous>, transform_indices = @transform_1, window_bounds = array<i64: 48, 96>}, {pipeline_mode = #tpu.pipeline_mode<synchronous>, transform_indices = @transform_2, window_bounds = array<i64: 1, 96>}, {pipeline_mode = #tpu.pipeline_mode<synchronous>, transform_indices = @transform_3, window_bounds = array<i64: 32, 32>}, {pipeline_mode = #tpu.pipeline_mode<synchronous>, transform_indices = @transform_4, window_bounds = array<i64: 32, 128>}, {pipeline_mode = #tpu.pipeline_mode<synchronous>, transform_indices = @transform_5, window_bounds = array<i64: 1, 128>}, {transform_indices = @transform_6, window_bounds = array<i64: 1, 16, 128>}]} {
    %c0 = arith.constant 0 : index
    %c0_0 = arith.constant 0 : index
    %c0_1 = arith.constant 0 : index
    %0 = vector.load %arg1[%c0, %c0_0, %c0_1] : memref<1x24x48xf32, #tpu.memory_space<vmem>>, vector<1x24x48xf32>
    %1 = vector.shape_cast %0 : vector<1x24x48xf32> to vector<24x48xf32>
    %c0_2 = arith.constant 0 : index
    %c0_3 = arith.constant 0 : index
    %2 = vector.load %arg2[%c0_2, %c0_3] : memref<48x96xf32, #tpu.memory_space<vmem>>, vector<48x96xf32>
    %cst = arith.constant dense<0.000000e+00> : vector<24x96xf32>
    %3 = tpu.matmul %1, %2, %cst {dimension_numbers = #tpu.dot_dimension_numbers<[1], [0], [0], [1], [0, 0, 1, 1], [], []>} : vector<24x48xf32>, vector<48x96xf32>, vector<24x96xf32> -> vector<24x96xf32>
    %c0_4 = arith.constant 0 : index
    %c0_5 = arith.constant 0 : index
    %4 = vector.load %arg3[%c0_4, %c0_5] : memref<1x96xf32, #tpu.memory_space<vmem>>, vector<1x96xf32>
    %5 = vector.broadcast %4 : vector<1x96xf32> to vector<24x96xf32>
    %6 = arith.addf %3, %5 : vector<24x96xf32>
    %7 = vector.extract_strided_slice %6 {offsets = [0, 0], sizes = [16, 32], strides = [1, 1]} : vector<24x96xf32> to vector<16x32xf32>
    %8 = vector.extract_strided_slice %6 {offsets = [16, 32], sizes = [8, 32], strides = [1, 1]} : vector<24x96xf32> to vector<8x32xf32>
    %9 = vector.extract_strided_slice %6 {offsets = [16, 64], sizes = [8, 32], strides = [1, 1]} : vector<24x96xf32> to vector<8x32xf32>
    %c0_6 = arith.constant 0 : index
    %c0_7 = arith.constant 0 : index
    %10 = vector.load %arg4[%c0_6, %c0_7] : memref<32x32xf32, #tpu.memory_space<vmem>>, vector<32x32xf32>
    %11 = tpu.concatenate %8, %8, %8, %8 in 0 : vector<8x32xf32>, vector<8x32xf32>, vector<8x32xf32>, vector<8x32xf32> -> vector<32x32xf32>
    %12 = arith.mulf %11, %10 : vector<32x32xf32>
    %13 = tpu.concatenate %9, %9, %9, %9 in 0 : vector<8x32xf32>, vector<8x32xf32>, vector<8x32xf32>, vector<8x32xf32> -> vector<32x32xf32>
    %14 = arith.mulf %13, %10 : vector<32x32xf32>
    %cst_8 = arith.constant dense<0.000000e+00> : vector<16x32xf32>
    %15 = tpu.matmul %7, %12, %cst_8 {dimension_numbers = #tpu.dot_dimension_numbers<[1], [1], [0], [0], [0, 0, 1, 0], [], []>} : vector<16x32xf32>, vector<32x32xf32>, vector<16x32xf32> -> vector<16x32xf32>
    %cst_9 = arith.constant dense<0xFF800000> : vector<16xf32>
    %16 = vector.multi_reduction <maximumf>, %15, %cst_9 [1] : vector<16x32xf32> to vector<16xf32>
    %17 = vector.shape_cast %16 : vector<16xf32> to vector<16x1xf32>
    %18 = vector.broadcast %17 : vector<16x1xf32> to vector<16x32xf32>
    %19 = arith.subf %15, %18 : vector<16x32xf32>
    %cst_10 = arith.constant 0.353553385 : f32
    %20 = vector.broadcast %cst_10 : f32 to vector<16x32xf32>
    %21 = arith.mulf %19, %20 : vector<16x32xf32>
    %22 = math.exp %21 : vector<16x32xf32>
    %23 = tpu.concatenate %14, %10 in 1 : vector<32x32xf32>, vector<32x32xf32> -> vector<32x64xf32>
    %cst_11 = arith.constant dense<0.000000e+00> : vector<16x64xf32>
    %24 = tpu.matmul %22, %23, %cst_11 {dimension_numbers = #tpu.dot_dimension_numbers<[1], [0], [0], [1], [0, 0, 1, 1], [], []>} : vector<16x32xf32>, vector<32x64xf32>, vector<16x64xf32> -> vector<16x64xf32>
    %25 = vector.extract_strided_slice %24 {offsets = [0, 0], sizes = [16, 32], strides = [1, 1]} : vector<16x64xf32> to vector<16x32xf32>
    %26 = vector.extract_strided_slice %24 {offsets = [0, 32], sizes = [16, 32], strides = [1, 1]} : vector<16x64xf32> to vector<16x32xf32>
    %27 = tpu.reciprocal %26 : vector<16x32xf32> -> vector<16x32xf32>
    %28 = arith.mulf %25, %27 : vector<16x32xf32>
    %c0_12 = arith.constant 0 : index
    %c0_13 = arith.constant 0 : index
    %29 = vector.load %arg5[%c0_12, %c0_13] : memref<32x128xf32, #tpu.memory_space<vmem>>, vector<32x128xf32>
    %cst_14 = arith.constant dense<0.000000e+00> : vector<16x128xf32>
    %30 = tpu.matmul %28, %29, %cst_14 {dimension_numbers = #tpu.dot_dimension_numbers<[1], [0], [0], [1], [0, 0, 1, 1], [], []>} : vector<16x32xf32>, vector<32x128xf32>, vector<16x128xf32> -> vector<16x128xf32>
    %c0_15 = arith.constant 0 : index
    %c0_16 = arith.constant 0 : index
    %31 = vector.load %arg6[%c0_15, %c0_16] : memref<1x128xf32, #tpu.memory_space<vmem>>, vector<1x128xf32>
    %32 = vector.broadcast %31 : vector<1x128xf32> to vector<16x128xf32>
    %33 = arith.addf %30, %32 : vector<16x128xf32>
    %c0_17 = arith.constant 0 : index
    %c0_18 = arith.constant 0 : index
    %c0_19 = arith.constant 0 : index
    %34 = vector.load %arg7[%c0_17, %c0_18, %c0_19] : memref<1x16x128xf32, #tpu.memory_space<vmem>>, vector<1x16x128xf32>
    %35 = vector.shape_cast %34 : vector<1x16x128xf32> to vector<16x128xf32>
    %36 = vector.shape_cast %33 : vector<16x128xf32> to vector<1x16x128xf32>
    tpu.vector_store %arg7[%c0_17, %c0_18, %c0_19], %36 {strides = array<i32>} : memref<1x16x128xf32, #tpu.memory_space<vmem>>, vector<1x16x128xf32>,
    return
  }
  func.func @transform_0(%arg0: i32) -> (i32, i32, i32) {
    %c0_i32 = arith.constant 0 : i32
    %c0_i32_0 = arith.constant 0 : i32
    %c0_i32_1 = arith.constant 0 : i32
    return %arg0, %c0_i32, %c0_i32_0 : i32, i32, i32
  }
  func.func @transform_1(%arg0: i32) -> (i32, i32) {
    %c0_i32 = arith.constant 0 : i32
    %c0_i32_0 = arith.constant 0 : i32
    %c0_i32_1 = arith.constant 0 : i32
    return %c0_i32, %c0_i32_0 : i32, i32
  }
  func.func @transform_2(%arg0: i32) -> (i32, i32) {
    %c0_i32 = arith.constant 0 : i32
    %c0_i32_0 = arith.constant 0 : i32
    %c0_i32_1 = arith.constant 0 : i32
    return %c0_i32, %c0_i32_0 : i32, i32
  }
  func.func @transform_3(%arg0: i32) -> (i32, i32) {
    %c0_i32 = arith.constant 0 : i32
    %c0_i32_0 = arith.constant 0 : i32
    %c0_i32_1 = arith.constant 0 : i32
    return %c0_i32, %c0_i32_0 : i32, i32
  }
  func.func @transform_4(%arg0: i32) -> (i32, i32) {
    %c0_i32 = arith.constant 0 : i32
    %c0_i32_0 = arith.constant 0 : i32
    %c0_i32_1 = arith.constant 0 : i32
    return %c0_i32, %c0_i32_0 : i32, i32
  }
  func.func @transform_5(%arg0: i32) -> (i32, i32) {
    %c0_i32 = arith.constant 0 : i32
    %c0_i32_0 = arith.constant 0 : i32
    %c0_i32_1 = arith.constant 0 : i32
    return %c0_i32, %c0_i32_0 : i32, i32
  }
  func.func @transform_6(%arg0: i32) -> (i32, i32, i32) {
    %c0_i32 = arith.constant 0 : i32
    %c0_i32_0 = arith.constant 0 : i32
    %c0_i32_1 = arith.constant 0 : i32
    return %arg0, %c0_i32, %c0_i32_0 : i32, i32, i32
  }
}

</mosaic_0001>

<bundles_post_ra>
// kernel: cross_attention.1
= control target key start
LH: loop header
LB: loop body
LE: loop exit
PB: predicated region body
PF: predicated region fallthrough
CT: control target
= control target key end

     0   :  { %11 = vsyncpa [#allocation3], 0  ;;  %s1318_s0 = inlined_call_operand.vmem [shape: f32[2,24,48], index: 0, kind: input, shape index: {}]   ;;  %s1319_s1 = inlined_call_operand.vmem [shape: f32[48,96], index: 1, kind: input, shape index: {}]   ;;  %s1320_s2 = inlined_call_operand.vmem [shape: f32[1,96], index: 2, kind: input, shape index: {}]   ;;  %s1321_s3 = inlined_call_operand.vmem [shape: f32[32,32], index: 3, kind: input, shape index: {}]   ;;  %s1322_s4 = inlined_call_operand.vmem [shape: f32[32,128], index: 4, kind: input, shape index: {}]   ;;  %s1323_s5 = inlined_call_operand.vmem [shape: f32[1,128], index: 5, kind: input, shape index: {}]   ;;  %s1324_s6 = inlined_call_operand.hbm [shape: f32[2,16,128], index: 6, kind: output, shape index: {}]  }
   0x1   :  { %13 = vsyncpa [#allocation3 + $0x1], 0  ;;  %s1124_s21 = smov 0   ;;  %s1126_s22 = smov 0  }
   0x2   :  { %s1128_s23 = smov 0   ;;  %s1130_s24 = smov 0  }
   0x3 LB: > { %s1145_s25 = sadd.s32 4294967295, %s1078_s24   ;;  %s795_s26 = sadd.s32 4294967294, %s1078_s24   ;;  %s1078_s24 = sphi %s1130_s24, %s1330_s24   ;;  %s1074_s23 = sphi %s1128_s23, %s1329_s23   ;;  %s1070_s22 = sphi %s1126_s22, %s1328_s22   ;;  %s1066_s21 = sphi %s1124_s21, %s1327_s21  }
   0x4   : > { %s1149_s27 = sadd.s32 1, %s1078_s24   ;;  %s157_s28 = sadd.s32 1, %s1074_s23 }
   0x5   : > { %s154_s29 = ssub.s32 %s1078_s24, %s1149_s27  ;;  %p167_p0 = scmp.ne.s32.totalorder %s1074_s23, %s1070_s22 }
   0x6   : > { %p155_p1 = scmp.eq.s32.totalorder %s154_s29, 0  ;;  %p168_p2 = scmp.eq.s32.totalorder %s1145_s25, 1 }
   0x7   : > { %p173_p3 = scmp.ne.s32.totalorder %s1070_s22, %s1066_s21  ;;  %p174_p4 = scmp.eq.s32.totalorder %s795_s26, 1 }
   0x8   : > { %s1160_s30 = scalar_select %p155_p1, %s1074_s23, %s157_s28  }
   0x9   : > { %p1162_p5 = por %p168_p2, %p167_p0  ;;  %p1166_p6 = por %p174_p4, %p173_p3 }
   0xa   : > { %p798_p7 = scmp.ge.s32.totalorder %s1078_s24, 1  ;;  %p215_p8 = scmp.lt.s32.totalorder %s1078_s24, 3 }
   0xc   : > { %p216_p9 = pnand %p798_p7, %p215_p8 }
   0xd   : > { %v253_v0 = vld [vmem:[%s1319_s1] sm:$0xff] (!%p216_p9)  ;;  %v254_v1 = vld [vmem:[%s1319_s1 + $0x8] sm:$0xff] (!%p216_p9)  ;;  %v255_v2 = vld [vmem:[%s1319_s1 + $0x10] sm:$0xff] (!%p216_p9)  ;;  %v1080_v3 = vmov (!%p216_p9), 0.0|0.0   ;;  %vm1081_vm0 = vmmov (!%p216_p9), 0   ;;  %v1082_v6 = vmov (!%p216_p9), 0.0  }
   0xe   : > { %219 = sbr.rel (%p216_p9) target bundleno = 1334 (0x536), region = 44  ;;  %903 = vmatprep.subr.bf16.mxu0 (!%p216_p9), %v1080_v3  ;;  %v904_v4 = vpack.c.bf16 (!%p216_p9), %v254_v1, %v253_v0  ;;  %v256_v5 = vld [vmem:[%s1319_s1 + $0x18] sm:$0xff] (!%p216_p9)  ;;  %861 = vmatprep.mubr.msk.f32.mxu0 (!%p216_p9), %vm1081_vm0, %v1082_v6  ;;  %p245_p10 = scmp.lt.s32.totalorder (!%p216_p9), %s1145_s25, 1  ;;  %v358_v7 = vld [vmem:[%s1321_s3 + $0x10] sm:$0xff] (!%p216_p9)  ;;  %v356_v8 = vld [vmem:[%s1321_s3] sm:$0xff] (!%p216_p9)  ;;  %vm266_vm1 = vcmask (!%p216_p9), 392192  }
   0xf   : > { %v907_v9 = vpack.c.bf16 (!%p216_p9), %v256_v5, %v255_v2  ;;  %s1083_s28 = smov (!%p216_p9), 32   ;;  %v257_v10 = vld [vmem:[%s1319_s1 + $0x20] sm:$0xff] (!%p216_p9)  ;;  %v258_v11 = vld [vmem:[%s1319_s1 + $0x28] sm:$0xff] (!%p216_p9)  ;;  %v359_v12 = vld [vmem:[%s1321_s3 + $0x18] sm:$0xff] (!%p216_p9)  ;;  %vm408_vm2 = vcmask (!%p216_p9), 261120   ;;  %s1085_s29 = smov (!%p216_p9), 64  }
  0x10   : > { %905 = vmatpush3.bf16.msra.mxu0 (!%p216_p9), %v904_v4  ;;  %368 = vrot.lane.b32.xlu1 (!%p216_p9), %v358_v7, %s1083_s28  ;;  %v357_v13 = vld [vmem:[%s1321_s3 + $0x8] sm:$0xff] (!%p216_p9)  ;;  %v910_v14 = vpack.c.bf16 (!%p216_p9), %v258_v11, %v257_v10  ;;  %v801_v18 = vld [vmem:[%s1320_s2] ss:$0 sm:$0xff] (!%p216_p9)  ;;  %vm913_vm3 = vmpackc.low (!%p216_p9), %vm408_vm2, %vm408_vm2  ;;  %s242_s17 = sand.u32 (!%p216_p9), 1, %s1070_s22   ;;  %s821_s9 = sshll.u32 (!%p216_p9), %s1145_s25, 8 }
  0x11   : > { %906 = vmatprep.subr.bf16.mxu0 (!%p216_p9), %v1080_v3  ;;  %364 = vrot.lane.b32.xlu0 (!%p216_p9), %v356_v8, %s1083_s28  ;;  %s799_s18 = sshll.u32 (!%p216_p9), %s242_s17, 4  ;;  %s1275_s11 = scalar_lea.hbm (!%p216_p9), %s1324_s6, %s821_s9 }
  0x12   : > { %s1277_s12 = scalar_lea.sflag (!%p216_p9), [#allocation3], %s242_s17 }
  0x14   : > { %908 = vmatpush3.bf16.msra.mxu0 (!%p216_p9), %v907_v9  ;;  %370 = vrot.lane.b32.xlu1 (!%p216_p9), %v359_v12, %s1083_s28 }
  0x15   : > { %s246_s26 = scalar_select %p245_p10, %s1145_s25, 1  ;;  %909 = vmatprep.subr.bf16.mxu0 %v1080_v3  ;;  %366 = vrot.lane.b32.xlu0 %v357_v13, %s1083_s28 }
  0x16   : > { %s1084_s28 = smov 96   ;;  %s1086_s25 = smov [#allocation2]  }
  0x17   : > { %s940_s14 = smul.u32 24, %s246_s26  ;;  %s244_s26 = scalar_lea.vmem [#allocation2], %s799_s18 }
  0x18   : > { %911 = vmatpush3.bf16.msra.mxu0 %v910_v14 }
  0x19   : > { %s249_s19 = scalar_lea.vmem %s1318_s0, %s940_s14  ;;  %s1020_s14 = sshll.u32 %s1086_s25, 4  ;;  %s1021_s14 = int_to_ptr.vmem [resolvable:$false] %s1020_s14 }
  0x1a   : > { %v250_v15 = vld [vmem:[%s249_s19] sm:$0xff]  ;;  %v251_v16 = vld [vmem:[%s249_s19 + $0x8] sm:$0xff]  ;;  %v252_v17 = vld [vmem:[%s249_s19 + $0x10] sm:$0xff]  ;;  %s1022_s15 = scalar_lea.vmem %s1021_s14, 512 }
  0x1b   : > { %862 = vmatmul.mubr.msk.f32.vlgmr.msra.gmra.mrb[0].mxu0 %vm266_vm1, %v250_v15 }
  0x1c   : > { %864 = vmatprep.mubr.msk.f32.mxu0 %vm1081_vm0, %v1082_v6 }
  0x1f   : > { %865 = vmatmul.mubr.msk.f32.gmra.mrb[2].mxu0 %vm266_vm1, %v251_v16 }
  0x20   : > { %867 = vmatprep.mubr.msk.f32.mxu0 %vm1081_vm0, %v1082_v6 }
  0x23   : > { %868 = vmatmul.mubr.msk.f32.gmra.mrb[4].mxu0 %vm266_vm1, %v252_v17 }
  0x82   : > { %v1213_v22 = vpop.permute.xlu1 %368 }
  0x83   : > { %v1215_v23 = vpop.permute.xlu0 %364 }
  0x86   : > { %v1218_v27 = vpop.permute.xlu1 %370 }
  0x87   : > { %v1220_v29 = vpop.permute.xlu0 %366 }
  0xee   : > { %v342_v19 = vpop.f32.mrb[0].mxu0 }
  0xef   : > { %v343_v20 = vadd.f32 %v801_v18, %v342_v19  ;;  %v863_v21 = vpop.f32.mrb[1].mxu0  ;;  %v626_v19 = vld [vmem:[%s1322_s4 + $0x8] sm:$0xff] }
  0xf0   : > { %v627_v21 = vld [vmem:[%s1322_s4 + $0x10] sm:$0xff] }
  0xf1   : > { %878 = vmatprep.mubr.msk.f32.mxu1 %vm408_vm2, %v343_v20 }
  0xf2   : > { %v347_v24 = vpop.f32.mrb[2].mxu0 }
  0xf3   : > { %v348_v25 = vadd.f32 %v801_v18, %v347_v24  ;;  %v866_v26 = vpop.f32.mrb[3].mxu0 }
  0xf6   : > { %v352_v28 = vpop.f32.mrb[4].mxu0 }
  0xf7   : > { %v353_v30 = vadd.f32 %v801_v18, %v352_v28  ;;  %v869_v31 = vpop.f32.mrb[5].mxu0  ;;  %v625_v18 = vld [vmem:[%s1322_s4] sm:$0xff] }
  0xf8   : > { %v932_v20 = vpack.c.bf16 %v626_v19, %v625_v18 }
  0xf9   : > { %v378_v32 = vmul.f32 %v1213_v22, %v353_v30  ;;  %v379_v33 = vmul.f32 %v1218_v27, %v353_v30  ;;  %v376_v34 = vmul.f32 %v1215_v23, %v353_v30  ;;  %v377_v35 = vmul.f32 %v1220_v29, %v353_v30 }
  0xfb   : > { %v993_v36 = vpack.i.bf16 %v379_v33, %v378_v32  ;;  %v988_v37 = vpack.i.bf16 %v377_v35, %v376_v34  ;;  %v813_v32 = vld [vmem:[%s1323_s5] ss:$0 sm:$0xff] }
  0xfd   : > { %994 = vrot.lane.b32.xlu1 %v993_v36, %s1084_s28  ;;  %989 = vrot.lane.b32.xlu0 %v988_v37, %s1084_s28 }
 0x101   : > { %382 = vrot.lane.b32.xlu1 %v357_v13, %s1085_s29  ;;  %380 = vrot.lane.b32.xlu0 %v356_v8, %s1085_s29 }
 0x105   : > { %386 = vrot.lane.b32.xlu1 %v359_v12, %s1085_s29  ;;  %384 = vrot.lane.b32.xlu0 %v358_v7, %s1085_s29 }
 0x16f   : > { %v995_v38 = vpop.permute.xlu1 %994  ;;  %v990_v39 = vpop.permute.xlu0 %989 }
 0x170   : > { %v997_v40 = vunpack.i.h.bf16 %v995_v38  ;;  %v996_v41 = vunpack.i.l.bf16 %v995_v38  ;;  %v992_v42 = vunpack.i.h.bf16 %v990_v39  ;;  %v991_v43 = vunpack.i.l.bf16 %v990_v39 }
 0x172   : > { %v912_v44 = vpack.c.bf16 %v992_v42, %v991_v43  ;;  %v918_v45 = vpack.c.bf16 %v997_v40, %v996_v41 }
 0x173   : > { %v383_v50 = vpop.permute.xlu1 %382  ;;  %v381_v51 = vpop.permute.xlu0 %380 }
 0x174   : > { %914 = vmatprep.subr.msk.bf16.mxu1 %vm913_vm3, %v912_v44  ;;  %v393_v57 = vmul.f32 %v383_v50, %v353_v30  ;;  %v392_v58 = vmul.f32 %v381_v51, %v353_v30 }
 0x175   : > { %917 = vmatpush3.bf16.xpose.msk.msra.mxu1 %vm913_vm3, %v912_v44 }
 0x176   : > { %920 = vmatprep.subr.msk.bf16.mxu1 %vm913_vm3, %v918_v45  ;;  %v998_v59 = vpack.i.bf16 %v393_v57, %v392_v58 }
 0x177   : > { %v387_v52 = vpop.permute.xlu1 %386  ;;  %v385_v53 = vpop.permute.xlu0 %384 }
 0x178   : > { %v395_v54 = vmul.f32 %v387_v52, %v353_v30  ;;  %v394_v55 = vmul.f32 %v385_v53, %v353_v30 }
 0x17a   : > { %v1003_v56 = vpack.i.bf16 %v395_v54, %v394_v55 }
 0x17d   : > { %923 = vmatpush3.bf16.xpose.msk.msra.mxu1 %vm913_vm3, %v918_v45 }
 0x17e   : > { %933 = vmatprep.subr.bf16.mxu1 %v932_v20 }
 0x184   : > { %879 = vmatmul.mubr.msk.f32.vlgmr.msra.gmra.mrb[0].mxu1 %vm408_vm2, %v348_v25 }
 0x185   : > { %935 = vmatpush3.bf16.msra.mxu1 %v932_v20 }
 0x257   : > { %v880_v46 = vpop.f32.mrb[0].mxu1 }
 0x258   : > { %v489_v47 = vpop.f32.mrb[1].mxu1  ;;  %v501_v48 = vsel %vm408_vm2, %v880_v46, -inf }
 0x259   : > { %502 = vmax.xlane.f32.xlu1 %v501_v48  ;;  %v498_v49 = vsel %vm408_vm2, %v489_v47, -inf }
 0x25a   : > { %499 = vmax.xlane.f32.xlu0 %v498_v49 }
 0x26a   : > { %1004 = vrot.lane.b32.xlu1 %v1003_v56, %s1085_s29 }
 0x270   : > { %999 = vrot.lane.b32.xlu0 %v998_v59, %s1085_s29  ;;  %s733_s29 = sshll.u32 %s244_s26, 4  ;;  %s1270_s29 = int_to_ptr.vmem [resolvable:$true] %s733_s29 }
 0x271   : > { %s1016_s13 = scalar_lea.vmem %s1270_s29, 256  ;;  %p1023_p0 = scmp.lt.s32.totalorder %s1270_s29, %s1021_s14 }
 0x272   : > { %p1017_p11 = scmp.ne.s32.totalorder %s1270_s29, %s1016_s13  ;;  %p1024_p1 = scmp.lt.s32.totalorder %s1022_s15, %s1016_s13 }
 0x274   : > { %p1018_p12 = pnand %p1017_p11, %p1162_p5  ;;  %p1025_p2 = por %p1024_p1, %p1023_p0 }
 0x276   : > { %p1019_p13 = pneg %p1018_p12 }
 0x278   : > { %p1026_p3 = pnand %p1025_p2, %p1019_p13 }
 0x2e6   : > { %v503_v60 = vpop.xlane.xlu1 %502 }
 0x2e7   : > { %v505_v61 = vsub.f32 %v880_v46, %v503_v60  ;;  %v500_v62 = vpop.xlane.xlu0 %499 }
 0x2e8   : > { %v504_v63 = vsub.f32 %v489_v47, %v500_v62 }
 0x2e9   : > { %v507_v0 = vmul.f32 0.35355338, %v505_v61 }
 0x2ea   : > { %v506_v1 = vmul.f32 0.35355338, %v504_v63  ;;  %v1005_v2 = vpop.permute.xlu1 %1004 }
 0x2eb   : > { %v510_v3 = vmul.f32 1.442695, %v507_v0  ;;  %v1007_v4 = vunpack.i.h.bf16 %v1005_v2  ;;  %v1006_v5 = vunpack.i.l.bf16 %v1005_v2  ;;  %v1000_v6 = vpop.permute.xlu0 %999 }
 0x2ec   : > { %v508_v7 = vmul.f32 1.442695, %v506_v1  ;;  %v1002_v8 = vunpack.i.h.bf16 %v1000_v6  ;;  %v1001_v9 = vunpack.i.l.bf16 %v1000_v6 }
 0x2ed   : > { %v530_v10 = vsel %vm408_vm2, %v1006_v5, %v1213_v22  ;;  %v531_v13 = vsel %vm408_vm2, %v1007_v4, %v1218_v27  ;;  %v628_v22 = vld [vmem:[%s1322_s4 + $0x18] sm:$0xff] }
 0x2ee   : > { %1008 = vpow2.f32 %v508_v7  ;;  %v528_v11 = vsel %vm408_vm2, %v1001_v9, %v1215_v23  ;;  %v529_v12 = vsel %vm408_vm2, %v1002_v8, %v1220_v29  ;;  %v928_v15 = vpack.c.bf16 %v531_v13, %v530_v10 }
 0x2ef   : > { %1010 = vpow2.f32 %v510_v3  ;;  %v924_v14 = vpack.c.bf16 %v529_v12, %v528_v11  ;;  %v936_v23 = vpack.c.bf16 %v628_v22, %v627_v21 }
 0x2f1   : > { %925 = vmatprep.subr.bf16.mxu0 %v924_v14  ;;  %937 = vmatprep.subr.bf16.mxu1 %v936_v23 }
 0x2f2   : > { %927 = vmatpush3.bf16.msra.mxu0 %v924_v14  ;;  %939 = vmatpush3.bf16.msra.mxu1 %v936_v23 }
 0x2f3   : > { %929 = vmatprep.subr.bf16.mxu0 %v928_v15 }
 0x2f6   : > { %931 = vmatpush3.bf16.msra.mxu0 %v928_v15 }
 0x2f8   : > { %v1009_v16 = vpop.eup %1008 }
 0x2f9   : > { %v1011_v17 = vpop.eup %1010  ;;  %889 = vmatprep.mubr.msk.f32.mxu0 %vm408_vm2, %v1009_v16 }
 0x2fa   : > { %890 = vmatmul.mubr.msk.f32.vlgmr.msra.gmra.mrb[6].mxu0 %vm408_vm2, %v1011_v17 }
 0x3cd   : > { %v891_v24 = vpop.f32.mrb[6].mxu0 }
 0x3ce   : > { %1012 = vrcp.f32 %v891_v24  ;;  %v604_v25 = vpop.f32.mrb[7].mxu0 }
 0x3cf   : > { %1014 = vrcp.f32 %v604_v25 }
 0x3d8   : > { %v1013_v26 = vpop.eup %1012 }
 0x3d9   : > { %v1015_v27 = vpop.eup %1014  ;;  %619 = vrot.lane.b32.xlu1 %v1013_v26, %s1084_s28 }
 0x3da   : > { %617 = vrot.lane.b32.xlu0 %v1015_v27, %s1084_s28 }
 0x44b   : > { %v620_v28 = vpop.permute.xlu1 %619 }
 0x44c   : > { %v618_v29 = vpop.permute.xlu0 %617  ;;  %v624_v31 = vmul.f32 %v891_v24, %v620_v28 }
 0x44d   : > { %v623_v30 = vmul.f32 %v618_v29, %v604_v25 }
 0x44f   : > { %900 = vmatprep.mubr.msk.f32.mxu1 %vm408_vm2, %v623_v30 }
 0x450   : > { %901 = vmatmul.mubr.msk.f32.vlgmr.msra.gmra.mrb[2].mxu1 %vm408_vm2, %v624_v31 }
 0x523   : > { %v902_v33 = vpop.f32.mrb[2].mxu1 }
 0x524   : > { %v714_v34 = vadd.f32 %v902_v33, %v813_v32  ;;  %v708_v35 = vpop.f32.mrb[3].mxu1 }
 0x525   : > { %v709_v36 = vadd.f32 %v813_v32, %v708_v35 }
 0x526   : > { %718 = vst [vmem:[%s244_s26 + $0x8] sm:$0xff] %v714_v34 }
 0x527   : > { %717 = vst [vmem:[%s244_s26] sm:$0xff] %v709_v36 }
 0x528   : > { %1029 = shalt.err (!%p1026_p3)
}
 0x529   : > { %s1030_s16 = scalar_lea.hbm %s1275_s11, 256  ;;  %s1034_s19 = scalar_lea.hbm %s1324_s6, 512 }
 0x52a   : > { %p1031_p4 = scmp.ne.s32.totalorder %s1275_s11, %s1030_s16  ;;  %p1035_p9 = scmp.lt.u32.totalorder %s1275_s11, %s1324_s6 }
 0x52b   : > { %p1036_p10 = scmp.lt.u32.totalorder %s1034_s19, %s1030_s16  ;;  %p1038_p12 = scmp.lt.u32.totalorder %s1030_s16, %s1275_s11 }
 0x52c   : > { %p1032_p7 = pnand %p1031_p4, %p1162_p5 }
 0x52d   : > { %p1037_p11 = por %p1036_p10, %p1035_p9 }
 0x52e   : > { %p1033_p8 = pneg %p1032_p7 }
 0x52f   : > { %p1039_p13 = por %p1038_p12, %p1037_p11 }
 0x531   : > { %p1040_p0 = pnand %p1039_p13, %p1033_p8 }
 0x533   : > { %1043 = shalt.err (!%p1040_p0)
}
 0x534   : > { %s1087_s9 = smov 128   ;;  %s1088_s28 = smov 8  }
 0x535   : > { %941 = dma.vmem_to_hbm [thread:$0]  (%p1162_p5), %s1270_s29, 256, %s1275_s11, %s1277_s12, %s1087_s9, %s1087_s9, %s1088_s28  }
 0x536 PF: > { %p947_p1 = scmp.ge.s32.totalorder %s1078_s24, 2  ;;  %s748_s10 = sand.u32 1, %s1066_s21  }
 0x537   : > { %s749_s13 = scalar_lea.sflag [#allocation3], %s748_s10 }
 0x538   : > { %p944_p2 = pnand %p947_p1, %p1166_p6 }
 0x53a   : > { %1061 = dma.done.wait (!%p944_p2), %s749_s13, 256  }
 0x53b   : > { %1063 = vsyncadd (!%p944_p2), %s749_s13, 4294967040  ;;  %p16_p3 = scmp.ge.s32.totalorder %s1149_s27, 4   ;;  %s1327_s21 = smov %s1070_s22 }
 0x53c   : > { %s1328_s22 = smov %s1074_s23  ;;  %s1329_s23 = smov %s1160_s30 }
 0x53d   : > { %s1330_s24 = smov %s1149_s27  ;;  %18 = sbr.rel (!%p16_p3) target bundleno = 3 (0x3), region = 79 }
 0x544   :  { %754 = vsyncpa [#allocation3], 1 }
 0x545   :  { %756 = vsyncpa [#allocation3 + $0x1], 1 }

</bundles_post_ra>
